<compile_context>
chip_gen: v7x
topology: tpu7x:2x2x1
jax: 0.10.0
libtpu: 0.0.40
codegen_flags: <defaults>
</compile_context>

<pallas_src>
import jax
import jax.numpy as jnp
from jax.experimental import pallas as pl
from jax.experimental.pallas import tpu as pltpu


def _make_predictor_kernel(T, D, F, fuse_taps):
    """Builds the VariancePredictor kernel for static (T, D, F)."""

    def kernel(x_ref, mask_ref, w1_ref, w2_ref, pp_ref, out_ref):
        x = x_ref[0].astype(jnp.float32)                  # (T, D)
        p = pp_ref[...]                                   # (8, F) packed params
        ri = jax.lax.broadcasted_iota(jnp.int32, (T, 1), 0)

        def shifted(h):
            # Conv1d(kernel=3, padding=1) neighbours via XLU roll + boundary zero.
            hp = jnp.where(ri == 0, 0.0, pltpu.roll(h, shift=1, axis=0))       # h[t-1]
            hn = jnp.where(ri == T - 1, 0.0, pltpu.roll(h, shift=T - 1, axis=0))  # h[t+1]
            return hp, hn

        def conv3(h, w_ref, b_row, cin):
            hp, hn = shifted(h)
            w = w_ref[...]                                # (3*cin, F), taps stacked [t-1, t, t+1]
            if fuse_taps:
                h3 = jnp.concatenate([hp, h, hn], axis=-1).astype(w.dtype)      # (T, 3*cin)
                y = jnp.dot(h3, w, preferred_element_type=jnp.float32)
            else:
                y = jnp.dot(hp.astype(w.dtype), w[0:cin],
                            preferred_element_type=jnp.float32)
                y = y + jnp.dot(h.astype(w.dtype), w[cin:2 * cin],
                                preferred_element_type=jnp.float32)
                y = y + jnp.dot(hn.astype(w.dtype), w[2 * cin:3 * cin],
                                preferred_element_type=jnp.float32)
            return y + b_row                              # (1, F) broadcast

        def leaky_relu(h):                                # nn.LeakyReLU default slope
            return jnp.where(h >= 0, h, 0.01 * h)

        def layer_norm(h, g, b):                          # nn.LayerNorm eps=1e-5 (f32 stats)
            mu = jnp.mean(h, axis=-1, keepdims=True)
            var = jnp.mean(jnp.square(h - mu), axis=-1, keepdims=True)
            return (h - mu) * jax.lax.rsqrt(var + 1e-5) * g + b

        h = conv3(x, w1_ref, p[0:1, :], D)
        h = layer_norm(leaky_relu(h), p[1:2, :], p[2:3, :])
        # dropout_1 / dropout_2: identity (eval-mode / deterministic forward)
        h = conv3(h, w2_ref, p[3:4, :], F)
        h = layer_norm(leaky_relu(h), p[4:5, :], p[5:6, :])

        # Linear(F -> 1), produced lane-dense as a (1, T) row:
        wl = p[6:7, :]                                    # (1, F)
        bl = p[7:8, 0:1]                                  # (1, 1)
        o = jnp.dot(wl, h.T, preferred_element_type=jnp.float32) + bl          # (1, T)

        mask = mask_ref[0]                                # (1, T) float, 1.0 == padded
        out_ref[0] = jnp.where(mask > 0.5, 0.0, o)        # masked_fill(mask, 0.0)

    return kernel


def variance_predictor(x, src_mask, params, *, matmul_dtype=None):
    """x: (B, T, D) f32, src_mask: (B, T) bool -> (B, T) f32."""
    B, T, D = x.shape
    F = params["w1"].shape[2]

    # Fuse the 3 conv taps into one matmul only when the lane concat is aligned.
    fuse_taps = (D % 128 == 0) and (F % 128 == 0)

    # Conv weights stored as (tap, Cin, Cout) with taps [t-1, t, t+1]; fuse to (3*Cin, Cout).
    w1f = params["w1"].reshape(3 * D, F)
    w2f = params["w2"].reshape(3 * F, F)
    if matmul_dtype is not None:                          # e.g. jnp.bfloat16 on v6e/v7x
        w1f = w1f.astype(matmul_dtype)
        w2f = w2f.astype(matmul_dtype)

    # Pack all small per-channel params into one (8, F) slab -> single DMA.
    # rows: [conv1 bias, ln1 gamma, ln1 beta, conv2 bias, ln2 gamma, ln2 beta,
    #        linear weight, linear bias (broadcast)]
    pp = jnp.concatenate(
        [params["b1"], params["g1"], params["be1"],
         params["b2"], params["g2"], params["be2"],
         params["wl"].reshape(1, F),
         jnp.broadcast_to(params["bl"].reshape(1, 1), (1, F))],
        axis=0).astype(jnp.float32)                       # (8, F)

    mask_f = src_mask.astype(jnp.float32)[:, None, :]     # (B, 1, T) lane-dense

    kernel = _make_predictor_kernel(T, D, F, fuse_taps)

    out = pl.pallas_call(
        kernel,
        out_shape=jax.ShapeDtypeStruct((B, 1, T), jnp.float32),
        grid_spec=pltpu.PrefetchScalarGridSpec(
            num_scalar_prefetch=0,
            grid=(B,),
            in_specs=[
                pl.BlockSpec((1, T, D), lambda b: (b, 0, 0)),     # x
                pl.BlockSpec((1, 1, T), lambda b: (b, 0, 0)),     # src mask (lane-dense)
                pl.BlockSpec((3 * D, F), lambda b: (0, 0)),       # conv1 weight (fused taps)
                pl.BlockSpec((3 * F, F), lambda b: (0, 0)),       # conv2 weight (fused taps)
                pl.BlockSpec((8, F), lambda b: (0, 0)),           # packed small params
            ],
            out_specs=pl.BlockSpec((1, 1, T), lambda b: (b, 0, 0)),
        ),
        compiler_params=pltpu.CompilerParams(
            dimension_semantics=("parallel",)),           # v7x: shard batch across TCs
    )(x, mask_f, w1f, w2f, pp)
    return out[:, 0, :]


def variance_adaptor_forward(x, src_mask, params, duration_mean,
                             mel_mask=None, duration_target=None,
                             max_len=None, d_control=1.0):
    """Mirrors VarianceAdaptor.forward.
    Returns (x_expanded, log_duration_prediction, mel_len, mel_mask)."""
    log_d = variance_predictor(x, src_mask, params)                    # (B, T)

    # NOTE: matches this specific module exactly: round(pred + duration_mean),
    # clamped at 0 (no exp()).
    if duration_target is not None:
        dur_f = jnp.clip(jnp.round((duration_target + duration_mean) * d_control), 0.0)
    else:
        dur_f = jnp.clip(jnp.round((log_d + duration_mean) * d_control), 0.0)
    dur = dur_f.astype(jnp.int32)                                      # (B, T)
    mel_len = jnp.sum(dur, axis=1).astype(jnp.int32)                   # (B,)

    # TODO(synk): LengthRegulator output length is data-dependent; JAX needs a
    # static shape, so max(mel_len) is resolved on the host ONCE and reused for
    # both the expanded width and the mel mask; expansion is a plain-JAX gather.
    need_mel_mask = duration_target is None
    max_mel = None
    if max_len is None or need_mel_mask:
        max_mel = int(jax.device_get(jnp.max(mel_len)))                # single host sync
    max_len_val = int(max_len) if max_len is not None else max_mel

    B, T, D = x.shape
    cum = jnp.cumsum(dur, axis=1)                                      # (B, T)
    frames = jnp.arange(max_len_val, dtype=jnp.int32)                  # (M,)
    # token owning frame t: number of tokens whose cumulative end <= t
    tok = jnp.sum(frames[None, :, None] >= cum[:, None, :], axis=-1)   # (B, M)
    valid = frames[None, :] < mel_len[:, None]                         # (B, M)
    tok = jnp.minimum(tok, T - 1)
    idx = jnp.broadcast_to(tok[:, :, None], (B, max_len_val, D))
    expanded = jnp.take_along_axis(x, idx, axis=1)
    expanded = jnp.where(valid[:, :, None], expanded, 0.0)             # pad() with zeros

    if need_mel_mask:
        # get_mask_from_lengths(mel_len) uses its own max(mel_len) width.
        ids = jnp.arange(max_mel, dtype=jnp.int32)[None, :]
        mel_mask = ids >= mel_len[:, None]

    return expanded, log_d, mel_len, mel_mask


if __name__ == "__main__":
    key = jax.random.PRNGKey(0)
    B, T, D, F = 2, 8, 32, 32            # batch, src seq len, encoder_dim, filter_size
    duration_mean = 2.0

    keys = jax.random.split(key, 8)

    def nrm(k, shape, scale):
        return (scale * jax.random.normal(k, shape, jnp.float32)).astype(jnp.float32)

    params = {
        # conv weights stored as (kernel_tap, Cin, Cout) == torch (Cout, Cin, k) transposed
        "w1": nrm(keys[0], (3, D, F), (1.0 / (3 * D)) ** 0.5),
        "b1": nrm(keys[1], (1, F), 0.05),
        "g1": jnp.ones((1, F), jnp.float32),
        "be1": jnp.zeros((1, F), jnp.float32),
        "w2": nrm(keys[2], (3, F, F), (1.0 / (3 * F)) ** 0.5),
        "b2": nrm(keys[3], (1, F), 0.05),
        "g2": jnp.ones((1, F), jnp.float32),
        "be2": jnp.zeros((1, F), jnp.float32),
        "wl": nrm(keys[4], (1, F), (1.0 / F) ** 0.5),
        "bl": nrm(keys[5], (1, 1), 0.05),
    }

    x = jax.random.normal(keys[6], (B, T, D), jnp.float32)
    lengths = jnp.array([T, T - 2], jnp.int32)
    src_mask = jnp.arange(T, dtype=jnp.int32)[None, :] >= lengths[:, None]   # (B, T) bool

    expanded, log_d, mel_len, mel_mask = variance_adaptor_forward(
        x, src_mask, params, duration_mean)

    jax.block_until_ready((expanded, log_d, mel_len, mel_mask))
    assert log_d.shape == (B, T)
    assert expanded.shape[0] == B and expanded.shape[2] == D
    assert mel_mask.shape[0] == B
    print("KERNEL_OK")
</pallas_src>

<mosaic_0001>
module attributes {stable_mosaic.version = 11 : i64} {
  func.func @kernel(%arg0: i32, %arg1: memref<1x8x32xf32, #tpu.memory_space<vmem>>, %arg2: memref<1x1x8xf32, #tpu.memory_space<vmem>>, %arg3: memref<96x32xf32, #tpu.memory_space<vmem>>, %arg4: memref<96x32xf32, #tpu.memory_space<vmem>>, %arg5: memref<8x32xf32, #tpu.memory_space<vmem>>, %arg6: memref<1x1x8xf32, #tpu.memory_space<vmem>>) attributes {dimension_semantics = [#tpu.dimension_semantics<parallel>], iteration_bounds = array<i64: 2>, scalar_prefetch = 0 : i64, scratch_operands = 0 : i64, tpu.core_type = #tpu.core_type<tc>, window_params = [{transform_indices = @transform_0, window_bounds = array<i64: 1, 8, 32>}, {transform_indices = @transform_1, window_bounds = array<i64: 1, 1, 8>}, {pipeline_mode = #tpu.pipeline_mode<synchronous>, transform_indices = @transform_2, window_bounds = array<i64: 96, 32>}, {pipeline_mode = #tpu.pipeline_mode<synchronous>, transform_indices = @transform_3, window_bounds = array<i64: 96, 32>}, {pipeline_mode = #tpu.pipeline_mode<synchronous>, transform_indices = @transform_4, window_bounds = array<i64: 8, 32>}, {transform_indices = @transform_5, window_bounds = array<i64: 1, 1, 8>}]} {
    %c0 = arith.constant 0 : index
    %c0_0 = arith.constant 0 : index
    %c0_1 = arith.constant 0 : index
    %0 = vector.load %arg1[%c0, %c0_0, %c0_1] : memref<1x8x32xf32, #tpu.memory_space<vmem>>, vector<1x8x32xf32>
    %1 = vector.shape_cast %0 : vector<1x8x32xf32> to vector<8x32xf32>
    %c0_2 = arith.constant 0 : index
    %c0_3 = arith.constant 0 : index
    %2 = vector.load %arg5[%c0_2, %c0_3] : memref<8x32xf32, #tpu.memory_space<vmem>>, vector<8x32xf32>
    %3 = tpu.iota {dimensions = array<i32: 0>} : vector<8x1xi32>
    %4 = vector.extract_strided_slice %2 {offsets = [0, 0], sizes = [1, 32], strides = [1, 1]} : vector<8x32xf32> to vector<1x32xf32>
    %c0_i32 = arith.constant 0 : i32
    %5 = vector.broadcast %c0_i32 : i32 to vector<8x1xi32>
    %6 = arith.cmpi eq, %3, %5 : vector<8x1xi32>
    %c1_i32 = arith.constant 1 : i32
    %7 = tpu.dynamic_rotate %1 by %c1_i32 dim 0 : vector<8x32xf32>, i32 -> vector<8x32xf32>
    %cst = arith.constant 0.000000e+00 : f32
    %8 = vector.shape_cast %6 : vector<8x1xi1> to vector<8x1xi1>
    %9 = vector.broadcast %8 : vector<8x1xi1> to vector<8x32xi1>
    %10 = vector.broadcast %cst : f32 to vector<8x32xf32>
    %11 = arith.select %9, %10, %7 : vector<8x32xi1>, vector<8x32xf32>
    %c7_i32 = arith.constant 7 : i32
    %12 = vector.broadcast %c7_i32 : i32 to vector<8x1xi32>
    %13 = arith.cmpi eq, %3, %12 : vector<8x1xi32>
    %c7_i32_4 = arith.constant 7 : i32
    %14 = tpu.dynamic_rotate %1 by %c7_i32_4 dim 0 : vector<8x32xf32>, i32 -> vector<8x32xf32>
    %cst_5 = arith.constant 0.000000e+00 : f32
    %15 = vector.shape_cast %13 : vector<8x1xi1> to vector<8x1xi1>
    %16 = vector.broadcast %15 : vector<8x1xi1> to vector<8x32xi1>
    %17 = vector.broadcast %cst_5 : f32 to vector<8x32xf32>
    %18 = arith.select %16, %17, %14 : vector<8x32xi1>, vector<8x32xf32>
    %c0_6 = arith.constant 0 : index
    %c0_7 = arith.constant 0 : index
    %19 = vector.load %arg3[%c0_6, %c0_7] : memref<96x32xf32, #tpu.memory_space<vmem>>, vector<96x32xf32>
    %20 = vector.extract_strided_slice %19 {offsets = [0, 0], sizes = [32, 32], strides = [1, 1]} : vector<96x32xf32> to vector<32x32xf32>
    %cst_8 = arith.constant dense<0.000000e+00> : vector<8x32xf32>
    %21 = tpu.matmul %11, %20, %cst_8 {dimension_numbers = #tpu.dot_dimension_numbers<[1], [0], [0], [1], [0, 0, 1, 1], [], []>} : vector<8x32xf32>, vector<32x32xf32>, vector<8x32xf32> -> vector<8x32xf32>
    %22 = vector.extract_strided_slice %19 {offsets = [32, 0], sizes = [32, 32], strides = [1, 1]} : vector<96x32xf32> to vector<32x32xf32>
    %cst_9 = arith.constant dense<0.000000e+00> : vector<8x32xf32>
    %23 = tpu.matmul %1, %22, %cst_9 {dimension_numbers = #tpu.dot_dimension_numbers<[1], [0], [0], [1], [0, 0, 1, 1], [], []>} : vector<8x32xf32>, vector<32x32xf32>, vector<8x32xf32> -> vector<8x32xf32>
    %24 = arith.addf %21, %23 : vector<8x32xf32>
    %25 = vector.extract_strided_slice %19 {offsets = [64, 0], sizes = [32, 32], strides = [1, 1]} : vector<96x32xf32> to vector<32x32xf32>
    %cst_10 = arith.constant dense<0.000000e+00> : vector<8x32xf32>
    %26 = tpu.matmul %18, %25, %cst_10 {dimension_numbers = #tpu.dot_dimension_numbers<[1], [0], [0], [1], [0, 0, 1, 1], [], []>} : vector<8x32xf32>, vector<32x32xf32>, vector<8x32xf32> -> vector<8x32xf32>
    %27 = arith.addf %24, %26 : vector<8x32xf32>
    %28 = vector.broadcast %4 : vector<1x32xf32> to vector<8x32xf32>
    %29 = arith.addf %27, %28 : vector<8x32xf32>
    %cst_11 = arith.constant 0.000000e+00 : f32
    %30 = vector.broadcast %cst_11 : f32 to vector<8x32xf32>
    %31 = arith.cmpf oge, %29, %30 : vector<8x32xf32>
    %cst_12 = arith.constant 0.00999999977 : f32
    %32 = vector.broadcast %cst_12 : f32 to vector<8x32xf32>
    %33 = arith.mulf %32, %29 : vector<8x32xf32>
    %34 = arith.select %31, %29, %33 : vector<8x32xi1>, vector<8x32xf32>
    %35 = vector.extract_strided_slice %2 {offsets = [1, 0], sizes = [1, 32], strides = [1, 1]} : vector<8x32xf32> to vector<1x32xf32>
    %36 = vector.extract_strided_slice %2 {offsets = [2, 0], sizes = [1, 32], strides = [1, 1]} : vector<8x32xf32> to vector<1x32xf32>
    %cst_13 = arith.constant dense<0.000000e+00> : vector<8xf32>
    %37 = vector.multi_reduction <add>, %34, %cst_13 [1] : vector<8x32xf32> to vector<8xf32>
    %38 = vector.shape_cast %37 : vector<8xf32> to vector<8x1xf32>
    %cst_14 = arith.constant 3.200000e+01 : f32
    %39 = vector.broadcast %cst_14 : f32 to vector<8x1xf32>
    %40 = arith.divf %38, %39 : vector<8x1xf32>
    %41 = vector.broadcast %40 : vector<8x1xf32> to vector<8x32xf32>
    %42 = arith.subf %34, %41 : vector<8x32xf32>
    %43 = arith.mulf %42, %42 : vector<8x32xf32>
    %cst_15 = arith.constant dense<0.000000e+00> : vector<8xf32>
    %44 = vector.multi_reduction <add>, %43, %cst_15 [1] : vector<8x32xf32> to vector<8xf32>
    %45 = vector.shape_cast %44 : vector<8xf32> to vector<8x1xf32>
    %cst_16 = arith.constant 3.200000e+01 : f32
    %46 = vector.broadcast %cst_16 : f32 to vector<8x1xf32>
    %47 = arith.divf %45, %46 : vector<8x1xf32>
    %48 = vector.broadcast %40 : vector<8x1xf32> to vector<8x32xf32>
    %49 = arith.subf %34, %48 : vector<8x32xf32>
    %cst_17 = arith.constant 9.99999974E-6 : f32
    %50 = vector.broadcast %cst_17 : f32 to vector<8x1xf32>
    %51 = arith.addf %47, %50 : vector<8x1xf32>
    %52 = math.rsqrt %51 : vector<8x1xf32>
    %53 = vector.broadcast %52 : vector<8x1xf32> to vector<8x32xf32>
    %54 = arith.mulf %49, %53 : vector<8x32xf32>
    %55 = vector.broadcast %35 : vector<1x32xf32> to vector<8x32xf32>
    %56 = arith.mulf %54, %55 : vector<8x32xf32>
    %57 = vector.broadcast %36 : vector<1x32xf32> to vector<8x32xf32>
    %58 = arith.addf %56, %57 : vector<8x32xf32>
    %59 = vector.extract_strided_slice %2 {offsets = [3, 0], sizes = [1, 32], strides = [1, 1]} : vector<8x32xf32> to vector<1x32xf32>
    %c0_i32_18 = arith.constant 0 : i32
    %60 = vector.broadcast %c0_i32_18 : i32 to vector<8x1xi32>
    %61 = arith.cmpi eq, %3, %60 : vector<8x1xi32>
    %c1_i32_19 = arith.constant 1 : i32
    %62 = tpu.dynamic_rotate %58 by %c1_i32_19 dim 0 : vector<8x32xf32>, i32 -> vector<8x32xf32>
    %cst_20 = arith.constant 0.000000e+00 : f32
    %63 = vector.shape_cast %61 : vector<8x1xi1> to vector<8x1xi1>
    %64 = vector.broadcast %63 : vector<8x1xi1> to vector<8x32xi1>
    %65 = vector.broadcast %cst_20 : f32 to vector<8x32xf32>
    %66 = arith.select %64, %65, %62 : vector<8x32xi1>, vector<8x32xf32>
    %c7_i32_21 = arith.constant 7 : i32
    %67 = vector.broadcast %c7_i32_21 : i32 to vector<8x1xi32>
    %68 = arith.cmpi eq, %3, %67 : vector<8x1xi32>
    %c7_i32_22 = arith.constant 7 : i32
    %69 = tpu.dynamic_rotate %58 by %c7_i32_22 dim 0 : vector<8x32xf32>, i32 -> vector<8x32xf32>
    %cst_23 = arith.constant 0.000000e+00 : f32
    %70 = vector.shape_cast %68 : vector<8x1xi1> to vector<8x1xi1>
    %71 = vector.broadcast %70 : vector<8x1xi1> to vector<8x32xi1>
    %72 = vector.broadcast %cst_23 : f32 to vector<8x32xf32>
    %73 = arith.select %71, %72, %69 : vector<8x32xi1>, vector<8x32xf32>
    %c0_24 = arith.constant 0 : index
    %c0_25 = arith.constant 0 : index
    %74 = vector.load %arg4[%c0_24, %c0_25] : memref<96x32xf32, #tpu.memory_space<vmem>>, vector<96x32xf32>
    %75 = vector.extract_strided_slice %74 {offsets = [0, 0], sizes = [32, 32], strides = [1, 1]} : vector<96x32xf32> to vector<32x32xf32>
    %cst_26 = arith.constant dense<0.000000e+00> : vector<8x32xf32>
    %76 = tpu.matmul %66, %75, %cst_26 {dimension_numbers = #tpu.dot_dimension_numbers<[1], [0], [0], [1], [0, 0, 1, 1], [], []>} : vector<8x32xf32>, vector<32x32xf32>, vector<8x32xf32> -> vector<8x32xf32>
    %77 = vector.extract_strided_slice %74 {offsets = [32, 0], sizes = [32, 32], strides = [1, 1]} : vector<96x32xf32> to vector<32x32xf32>
    %cst_27 = arith.constant dense<0.000000e+00> : vector<8x32xf32>
    %78 = tpu.matmul %58, %77, %cst_27 {dimension_numbers = #tpu.dot_dimension_numbers<[1], [0], [0], [1], [0, 0, 1, 1], [], []>} : vector<8x32xf32>, vector<32x32xf32>, vector<8x32xf32> -> vector<8x32xf32>
    %79 = arith.addf %76, %78 : vector<8x32xf32>
    %80 = vector.extract_strided_slice %74 {offsets = [64, 0], sizes = [32, 32], strides = [1, 1]} : vector<96x32xf32> to vector<32x32xf32>
    %cst_28 = arith.constant dense<0.000000e+00> : vector<8x32xf32>
    %81 = tpu.matmul %73, %80, %cst_28 {dimension_numbers = #tpu.dot_dimension_numbers<[1], [0], [0], [1], [0, 0, 1, 1], [], []>} : vector<8x32xf32>, vector<32x32xf32>, vector<8x32xf32> -> vector<8x32xf32>
    %82 = arith.addf %79, %81 : vector<8x32xf32>
    %83 = vector.broadcast %59 : vector<1x32xf32> to vector<8x32xf32>
    %84 = arith.addf %82, %83 : vector<8x32xf32>
    %cst_29 = arith.constant 0.000000e+00 : f32
    %85 = vector.broadcast %cst_29 : f32 to vector<8x32xf32>
    %86 = arith.cmpf oge, %84, %85 : vector<8x32xf32>
    %cst_30 = arith.constant 0.00999999977 : f32
    %87 = vector.broadcast %cst_30 : f32 to vector<8x32xf32>
    %88 = arith.mulf %87, %84 : vector<8x32xf32>
    %89 = arith.select %86, %84, %88 : vector<8x32xi1>, vector<8x32xf32>
    %90 = vector.extract_strided_slice %2 {offsets = [4, 0], sizes = [1, 32], strides = [1, 1]} : vector<8x32xf32> to vector<1x32xf32>
    %91 = vector.extract_strided_slice %2 {offsets = [5, 0], sizes = [1, 32], strides = [1, 1]} : vector<8x32xf32> to vector<1x32xf32>
    %cst_31 = arith.constant dense<0.000000e+00> : vector<8xf32>
    %92 = vector.multi_reduction <add>, %89, %cst_31 [1] : vector<8x32xf32> to vector<8xf32>
    %93 = vector.shape_cast %92 : vector<8xf32> to vector<8x1xf32>
    %cst_32 = arith.constant 3.200000e+01 : f32
    %94 = vector.broadcast %cst_32 : f32 to vector<8x1xf32>
    %95 = arith.divf %93, %94 : vector<8x1xf32>
    %96 = vector.broadcast %95 : vector<8x1xf32> to vector<8x32xf32>
    %97 = arith.subf %89, %96 : vector<8x32xf32>
    %98 = arith.mulf %97, %97 : vector<8x32xf32>
    %cst_33 = arith.constant dense<0.000000e+00> : vector<8xf32>
    %99 = vector.multi_reduction <add>, %98, %cst_33 [1] : vector<8x32xf32> to vector<8xf32>
    %100 = vector.shape_cast %99 : vector<8xf32> to vector<8x1xf32>
    %cst_34 = arith.constant 3.200000e+01 : f32
    %101 = vector.broadcast %cst_34 : f32 to vector<8x1xf32>
    %102 = arith.divf %100, %101 : vector<8x1xf32>
    %103 = vector.broadcast %95 : vector<8x1xf32> to vector<8x32xf32>
    %104 = arith.subf %89, %103 : vector<8x32xf32>
    %cst_35 = arith.constant 9.99999974E-6 : f32
    %105 = vector.broadcast %cst_35 : f32 to vector<8x1xf32>
    %106 = arith.addf %102, %105 : vector<8x1xf32>
    %107 = math.rsqrt %106 : vector<8x1xf32>
    %108 = vector.broadcast %107 : vector<8x1xf32> to vector<8x32xf32>
    %109 = arith.mulf %104, %108 : vector<8x32xf32>
    %110 = vector.broadcast %90 : vector<1x32xf32> to vector<8x32xf32>
    %111 = arith.mulf %109, %110 : vector<8x32xf32>
    %112 = vector.broadcast %91 : vector<1x32xf32> to vector<8x32xf32>
    %113 = arith.addf %111, %112 : vector<8x32xf32>
    %114 = vector.extract_strided_slice %2 {offsets = [6, 0], sizes = [1, 32], strides = [1, 1]} : vector<8x32xf32> to vector<1x32xf32>
    %115 = vector.extract_strided_slice %2 {offsets = [7, 0], sizes = [1, 1], strides = [1, 1]} : vector<8x32xf32> to vector<1x1xf32>
    %116 = tpu.transpose %113, [1, 0] : vector<8x32xf32> -> vector<32x8xf32>
    %cst_36 = arith.constant dense<0.000000e+00> : vector<1x8xf32>
    %117 = tpu.matmul %114, %116, %cst_36 {dimension_numbers = #tpu.dot_dimension_numbers<[1], [0], [0], [1], [0, 0, 1, 1], [], []>} : vector<1x32xf32>, vector<32x8xf32>, vector<1x8xf32> -> vector<1x8xf32>
    %118 = vector.broadcast %115 : vector<1x1xf32> to vector<1x8xf32>
    %119 = arith.addf %117, %118 : vector<1x8xf32>
    %c0_37 = arith.constant 0 : index
    %c0_38 = arith.constant 0 : index
    %c0_39 = arith.constant 0 : index
    %120 = vector.load %arg2[%c0_37, %c0_38, %c0_39] : memref<1x1x8xf32, #tpu.memory_space<vmem>>, vector<1x1x8xf32>
    %121 = vector.shape_cast %120 : vector<1x1x8xf32> to vector<1x8xf32>
    %cst_40 = arith.constant 5.000000e-01 : f32
    %122 = vector.broadcast %cst_40 : f32 to vector<1x8xf32>
    %123 = arith.cmpf ogt, %121, %122 : vector<1x8xf32>
    %cst_41 = arith.constant 0.000000e+00 : f32
    %124 = vector.broadcast %cst_41 : f32 to vector<1x8xf32>
    %125 = arith.select %123, %124, %119 : vector<1x8xi1>, vector<1x8xf32>
    %c0_42 = arith.constant 0 : index
    %c0_43 = arith.constant 0 : index
    %c0_44 = arith.constant 0 : index
    %126 = vector.load %arg6[%c0_42, %c0_43, %c0_44] : memref<1x1x8xf32, #tpu.memory_space<vmem>>, vector<1x1x8xf32>
    %127 = vector.shape_cast %126 : vector<1x1x8xf32> to vector<1x8xf32>
    %128 = vector.shape_cast %125 : vector<1x8xf32> to vector<1x1x8xf32>
    tpu.vector_store %arg6[%c0_42, %c0_43, %c0_44], %128 {strides = array<i32>} : memref<1x1x8xf32, #tpu.memory_space<vmem>>, vector<1x1x8xf32>,
    return
  }
  func.func @transform_0(%arg0: i32) -> (i32, i32, i32) {
    %c0_i32 = arith.constant 0 : i32
    %c0_i32_0 = arith.constant 0 : i32
    %c0_i32_1 = arith.constant 0 : i32
    return %arg0, %c0_i32, %c0_i32_0 : i32, i32, i32
  }
  func.func @transform_1(%arg0: i32) -> (i32, i32, i32) {
    %c0_i32 = arith.constant 0 : i32
    %c0_i32_0 = arith.constant 0 : i32
    %c0_i32_1 = arith.constant 0 : i32
    return %arg0, %c0_i32, %c0_i32_0 : i32, i32, i32
  }
  func.func @transform_2(%arg0: i32) -> (i32, i32) {
    %c0_i32 = arith.constant 0 : i32
    %c0_i32_0 = arith.constant 0 : i32
    %c0_i32_1 = arith.constant 0 : i32
    return %c0_i32, %c0_i32_0 : i32, i32
  }
  func.func @transform_3(%arg0: i32) -> (i32, i32) {
    %c0_i32 = arith.constant 0 : i32
    %c0_i32_0 = arith.constant 0 : i32
    %c0_i32_1 = arith.constant 0 : i32
    return %c0_i32, %c0_i32_0 : i32, i32
  }
  func.func @transform_4(%arg0: i32) -> (i32, i32) {
    %c0_i32 = arith.constant 0 : i32
    %c0_i32_0 = arith.constant 0 : i32
    %c0_i32_1 = arith.constant 0 : i32
    return %c0_i32, %c0_i32_0 : i32, i32
  }
  func.func @transform_5(%arg0: i32) -> (i32, i32, i32) {
    %c0_i32 = arith.constant 0 : i32
    %c0_i32_0 = arith.constant 0 : i32
    %c0_i32_1 = arith.constant 0 : i32
    return %arg0, %c0_i32, %c0_i32_0 : i32, i32, i32
  }
}

</mosaic_0001>

<bundles_post_ra>
// kernel: tpu_custom_call.1
= control target key start
LH: loop header
LB: loop body
LE: loop exit
PB: predicated region body
PF: predicated region fallthrough
CT: control target
= control target key end

     0   :  { %10 = vsyncpa [#allocation3], 0  ;;  %s1494_s0 = inlined_call_operand.vmem [shape: f32[2,8,32], index: 0, kind: input, shape index: {}]   ;;  %s1495_s1 = inlined_call_operand.vmem [shape: f32[2,1,8], index: 1, kind: input, shape index: {}]   ;;  %s1496_s2 = inlined_call_operand.vmem [shape: f32[96,32], index: 2, kind: input, shape index: {}]   ;;  %s1497_s3 = inlined_call_operand.vmem [shape: f32[96,32], index: 3, kind: input, shape index: {}]   ;;  %s1498_s4 = inlined_call_operand.vmem [shape: f32[8,32], index: 4, kind: input, shape index: {}]   ;;  %s1499_s5 = inlined_call_operand.hbm [shape: f32[2,1,8], index: 5, kind: output, shape index: {}]  }
   0x1   :  { %12 = vsyncpa [#allocation3 + $0x1], 0  ;;  %s1245_s18 = smov 0   ;;  %s1247_s19 = smov 0  }
   0x2   :  { %s1249_s20 = smov 0   ;;  %s1251_s21 = smov 0  }
   0x3 LB: > { %s1266_s22 = sadd.s32 4294967295, %s1208_s21   ;;  %s943_s23 = sadd.s32 4294967294, %s1208_s21   ;;  %s1208_s21 = sphi %s1251_s21, %s1505_s21   ;;  %s1204_s20 = sphi %s1249_s20, %s1504_s20   ;;  %s1200_s19 = sphi %s1247_s19, %s1503_s19   ;;  %s1196_s18 = sphi %s1245_s18, %s1502_s18  }
   0x4   : > { %s1270_s24 = sadd.s32 1, %s1208_s21   ;;  %s140_s25 = sadd.s32 1, %s1204_s20 }
   0x5   : > { %s137_s26 = ssub.s32 %s1208_s21, %s1270_s24  ;;  %p150_p0 = scmp.ne.s32.totalorder %s1204_s20, %s1200_s19 }
   0x6   : > { %p138_p1 = scmp.eq.s32.totalorder %s137_s26, 0  ;;  %p151_p2 = scmp.eq.s32.totalorder %s1266_s22, 1 }
   0x7   : > { %p156_p3 = scmp.ne.s32.totalorder %s1200_s19, %s1196_s18  ;;  %p157_p4 = scmp.eq.s32.totalorder %s943_s23, 1 }
   0x8   : > { %s1281_s27 = scalar_select %p138_p1, %s1204_s20, %s140_s25  }
   0x9   : > { %p1283_p5 = por %p151_p2, %p150_p0  ;;  %p1287_p6 = por %p157_p4, %p156_p3 }
   0xa   : > { %p946_p7 = scmp.ge.s32.totalorder %s1208_s21, 1  ;;  %p197_p8 = scmp.lt.s32.totalorder %s1208_s21, 3 }
   0xc   : > { %p198_p9 = pnand %p946_p7, %p197_p8 }
   0xd   : > { %v251_v0 = vld [vmem:[%s1496_s2 + $0x20] sm:$0xff] (!%p198_p9)  ;;  %v252_v1 = vld [vmem:[%s1496_s2 + $0x28] sm:$0xff] (!%p198_p9)  ;;  %v235_v3 = vlaneseq (!%p198_p9)  ;;  %v1210_v4 = vmov (!%p198_p9), 0.0|0.0   ;;  %v253_v7 = vld [vmem:[%s1496_s2 + $0x30] sm:$0xff] (!%p198_p9)  ;;  %p226_p10 = scmp.lt.s32.totalorder (!%p198_p9), %s1266_s22, 1  ;;  %vm1211_vm0 = vmmov (!%p198_p9), 0  }
   0xe   : > { %201 = sbr.rel (%p198_p9) target bundleno = 1338 (0x53a), region = 40  ;;  %v247_v2 = vld [vmem:[%s1496_s2] sm:$0xff] (!%p198_p9)  ;;  %1062 = vmatprep.subr.bf16.mxu0 (!%p198_p9), %v1210_v4  ;;  %v1063_v5 = vpack.c.bf16 (!%p198_p9), %v252_v1, %v251_v0  ;;  %1068 = vmatprep.subr.bf16.mxu1 (!%p198_p9), %v1210_v4  ;;  %v248_v6 = vld [vmem:[%s1496_s2 + $0x8] sm:$0xff] (!%p198_p9)  ;;  %v254_v8 = vld [vmem:[%s1496_s2 + $0x38] sm:$0xff] (!%p198_p9)  ;;  %v1212_v12 = vmov (!%p198_p9), 0.0   ;;  %vm259_vm1 = vcmask (!%p198_p9), 261120  }
   0xf   : > { %v1069_v9 = vpack.c.bf16 (!%p198_p9), %v248_v6, %v247_v2  ;;  %v249_v10 = vld [vmem:[%s1496_s2 + $0x10] sm:$0xff] (!%p198_p9)  ;;  %v250_v11 = vld [vmem:[%s1496_s2 + $0x18] sm:$0xff] (!%p198_p9)  ;;  %999 = vmatprep.mubr.msk.f32.mxu0 (!%p198_p9), %vm1211_vm0, %v1212_v12  ;;  %1010 = vmatprep.mubr.msk.f32.mxu1 (!%p198_p9), %vm1211_vm0, %v1212_v12  ;;  %v1066_v13 = vpack.c.bf16 (!%p198_p9), %v254_v8, %v253_v7  ;;  %v1327_v14 = vshrl.u32 (!%p198_p9), %v235_v3, 7  ;;  %v255_v16 = vld [vmem:[%s1496_s2 + $0x40] sm:$0xff] (!%p198_p9)  ;;  %s224_s14 = sand.u32 (!%p198_p9), 1, %s1200_s19   ;;  %s956_s23 = sshll.u32 (!%p198_p9), %s1266_s22, 4 }
  0x10   : > { %1064 = vmatpush3.bf16.msra.mxu0 (!%p198_p9), %v1063_v5  ;;  %v1072_v15 = vpack.c.bf16 (!%p198_p9), %v250_v11, %v249_v10  ;;  %v256_v17 = vld [vmem:[%s1496_s2 + $0x48] sm:$0xff] (!%p198_p9)  ;;  %v257_v21 = vld [vmem:[%s1496_s2 + $0x50] sm:$0xff] (!%p198_p9)  ;;  %v258_v22 = vld [vmem:[%s1496_s2 + $0x58] sm:$0xff] (!%p198_p9)  ;;  %s225_s25 = scalar_lea.vmem (!%p198_p9), [#allocation2], %s224_s14  ;;  %vm864_vm7 = vcmask (!%p198_p9), 57344   ;;  %s1452_s8 = scalar_lea.hbm (!%p198_p9), %s1499_s5, %s956_s23 }
  0x11   : > { %1070 = vmatpush3.bf16.msra.mxu1 (!%p198_p9), %v1069_v9  ;;  %1065 = vmatprep.subr.bf16.mxu0 (!%p198_p9), %v1210_v4  ;;  %vm237_vm2 = vcmp.eq.s32.totalorder (!%p198_p9), %v1327_v14, 0  ;;  %v1075_v19 = vpack.c.bf16 (!%p198_p9), %v256_v17, %v255_v16  ;;  %v1078_v25 = vpack.c.bf16 (!%p198_p9), %v258_v22, %v257_v21  ;;  %vm242_vm3 = vcmp.eq.s32.totalorder (!%p198_p9), %v1327_v14, 7  ;;  %v1370_v33 = vld [vmem:[%s1498_s4] sm:$0xff] (!%p198_p9)  ;;  %v521_v48 = vld [vmem:[%s1497_s3 + $0x28] sm:$0xff] (!%p198_p9)  ;;  %v522_v50 = vld [vmem:[%s1497_s3 + $0x30] sm:$0xff] (!%p198_p9)  ;;  %s879_s26 = sshll.u32 (!%p198_p9), %s225_s25, 4  ;;  %s1454_s26 = int_to_ptr.vmem [resolvable:$true] %s879_s26 }
  0x12   : > { %1071 = vmatprep.subr.bf16.mxu1 (!%p198_p9), %v1210_v4  ;;  %v482_v32 = vsub.s32 (!%p198_p9), 0, %v1327_v14  ;;  %v520_v47 = vld [vmem:[%s1497_s3 + $0x20] sm:$0xff] (!%p198_p9)  ;;  %v523_v51 = vld [vmem:[%s1497_s3 + $0x38] sm:$0xff] (!%p198_p9)  ;;  %v517_v54 = vld [vmem:[%s1497_s3 + $0x8] sm:$0xff] (!%p198_p9)  ;;  %v504_v62 = vsub.s32 (!%p198_p9), 1, %v1327_v14  ;;  %v509_v63 = vsub.s32 (!%p198_p9), 2, %v1327_v14 }
  0x13   : > { %v1081_v49 = vpack.c.bf16 (!%p198_p9), %v521_v48, %v520_v47  ;;  %v516_v52 = vld [vmem:[%s1497_s3] sm:$0xff] (!%p198_p9)  ;;  %v1084_v53 = vpack.c.bf16 (!%p198_p9), %v523_v51, %v522_v50  ;;  %v518_v56 = vld [vmem:[%s1497_s3 + $0x10] sm:$0xff] (!%p198_p9)  ;;  %v519_v57 = vld [vmem:[%s1497_s3 + $0x18] sm:$0xff] (!%p198_p9)  ;;  %v750_v22 = vsub.s32 (!%p198_p9), 3, %v1327_v14  ;;  %s1214_s9 = smov (!%p198_p9), [#allocation2]  }
  0x14   : > { %1067 = vmatpush3.bf16.msra.mxu0 (!%p198_p9), %v1066_v13  ;;  %v483_v34 = vrot.slane (!%p198_p9), %v1370_v33, %v482_v32  ;;  %v1087_v55 = vpack.c.bf16 (!%p198_p9), %v517_v54, %v516_v52  ;;  %v1090_v58 = vpack.c.bf16 (!%p198_p9), %v519_v57, %v518_v56  ;;  %v505_v0 = vrot.slane (!%p198_p9), %v1370_v33, %v504_v62  ;;  %v524_v5 = vld [vmem:[%s1497_s3 + $0x40] sm:$0xff] (!%p198_p9)  ;;  %v525_v6 = vld [vmem:[%s1497_s3 + $0x48] sm:$0xff] (!%p198_p9)  ;;  %v526_v10 = vld [vmem:[%s1497_s3 + $0x50] sm:$0xff] (!%p198_p9) }
  0x15   : > { %s1325_s30 = scalar_select %p226_p10, %s1266_s22, 1  ;;  %1073 = vmatpush3.bf16.msra.mxu1 %v1072_v15  ;;  %1074 = vmatprep.subr.bf16.mxu0 %v1210_v4  ;;  %v510_v3 = vrot.slane %v1370_v33, %v509_v63  ;;  %v1093_v8 = vpack.c.bf16 %v525_v6, %v524_v5  ;;  %v527_v11 = vld [vmem:[%s1497_s3 + $0x58] sm:$0xff] }
  0x16   : > { %1080 = vmatprep.subr.bf16.mxu1 %v1210_v4  ;;  %v1096_v15 = vpack.c.bf16 %v527_v11, %v526_v10  ;;  %s867_s22 = scalar_lea.sflag [#allocation3], %s224_s14 }
  0x17   : > { %s947_s10 = sshll.u32 %s1325_s30, 3  ;;  %s232_s17 = scalar_lea.vmem %s1495_s1, %s1325_s30 }
  0x18   : > { %s229_s13 = scalar_lea.vmem %s1494_s0, %s947_s10  ;;  %v861_v51 = vld [vmem:[%s232_s17] sm:$0x1]  ;;  %s1146_s30 = scalar_lea.vmem %s1454_s26, 16 }
  0x19   : > { %v233_v18 = vld [vmem:[%s229_s13] sm:$0xff]  ;;  %vm862_vm6 = vcmp.gt.f32.partialorder %v861_v51, 0.5  ;;  %p1147_p11 = scmp.ne.s32.totalorder %s1454_s26, %s1146_s30  ;;  %s1150_s10 = sshll.u32 %s1214_s9, 4  ;;  %s1151_s10 = int_to_ptr.vmem [resolvable:$false] %s1150_s10 }
  0x1a   : > { %v238_v20 = vrot.slane %v233_v18, 7  ;;  %1000 = vmatmul.mubr.msk.f32.vlgmr.msra.gmra.mrb[0].mxu0 %vm259_vm1, %v233_v18  ;;  %v243_v24 = vrot.slane %v233_v18, 1  ;;  %s1152_s11 = scalar_lea.vmem %s1151_s10, 32  ;;  %p1153_p0 = scmp.lt.s32.totalorder %s1454_s26, %s1151_s10 }
  0x1b   : > { %1076 = vmatpush3.bf16.msra.mxu0 %v1075_v19  ;;  %1021 = vmatprep.mubr.msk.f32.mxu0 %vm1211_vm0, %v1212_v12  ;;  %p1148_p12 = pnand %p1147_p11, %p1283_p5  ;;  %p1154_p1 = scmp.lt.s32.totalorder %s1152_s11, %s1146_s30 }
  0x1c   : > { %v241_v23 = vsel %vm237_vm2, 0.0, %v238_v20  ;;  %1077 = vmatprep.subr.bf16.mxu0 %v1210_v4  ;;  %v246_v26 = vsel %vm242_vm3, 0.0, %v243_v24 }
  0x1d   : > { %1011 = vmatmul.mubr.msk.f32.vlgmr.msra.gmra.mrb[0].mxu1 %vm259_vm1, %v241_v23  ;;  %p1149_p13 = pneg %p1148_p12  ;;  %p1155_p2 = por %p1154_p1, %p1153_p0 }
  0x1e   : > { %1032 = vmatprep.mubr.msk.f32.mxu1 %vm1211_vm0, %v1212_v12  ;;  %1082 = vmatpush3.bf16.msra.mxu1 %v1081_v49  ;;  %v783_v49 = vrot.slane %v1370_v33, 6 }
  0x1f   : > { %1079 = vmatpush3.bf16.msra.mxu0 %v1078_v25  ;;  %1083 = vmatprep.subr.bf16.mxu1 %v1210_v4  ;;  %p1156_p3 = pnand %p1155_p2, %p1149_p13 }
  0x20   : > { %1086 = vmatprep.subr.bf16.mxu0 %v1210_v4 }
  0x22   : > { %1022 = vmatmul.mubr.msk.f32.vlgmr.msra.gmra.mrb[2].mxu0 %vm259_vm1, %v246_v26  ;;  %1085 = vmatpush3.bf16.msra.mxu1 %v1084_v53 }
  0x23   : > { %1043 = vmatprep.mubr.msk.f32.mxu0 %vm1211_vm0, %v1212_v12  ;;  %1088 = vmatpush3.bf16.msra.mxu0 %v1087_v55 }
  0x24   : > { %1092 = vmatprep.subr.bf16.mxu1 %v1210_v4  ;;  %1089 = vmatprep.subr.bf16.mxu0 %v1210_v4 }
  0x27   : > { %1091 = vmatpush3.bf16.msra.mxu0 %v1090_v58 }
  0x28   : > { %1057 = vmatprep.subr.mxu0 %v1212_v12 }
  0xed   : > { %v329_v27 = vpop.f32.mrb[0].mxu0 }
  0xee   : > { %v1001_v28 = vpop.f32.mrb[1].mxu0 }
  0xf0   : > { %v402_v29 = vpop.f32.mrb[0].mxu1 }
  0xf1   : > { %v403_v30 = vadd.f32 %v402_v29, %v329_v27  ;;  %v1012_v31 = vpop.f32.mrb[1].mxu1 }
  0xf5   : > { %v475_v35 = vpop.f32.mrb[2].mxu0 }
  0xf6   : > { %v479_v36 = vadd.f32 %v475_v35, %v403_v30  ;;  %v1023_v37 = vpop.f32.mrb[3].mxu0 }
  0xf7   : > { %v1213_v37 = vmov 0  }
  0xf8   : > { %v484_v38 = vadd.f32 %v483_v34, %v479_v36  ;;  %1141 = vset.pattern.permute.xlu0 %v1213_v37 }
  0xfa   : > { %vm485_vm4 = vcmp.ge.f32.partialorder %v484_v38, 0.0  ;;  %v486_v39 = vmul.f32 0.01, %v484_v38 }
  0xfc   : > { %v487_v40 = vsel %vm485_vm4, %v484_v38, %v486_v39 }
  0xfd   : > { %v488_v41 = vsel %vm259_vm1, %v487_v40, 0.0 }
  0xfe   : > { %489 = vadd.xlane.f32.xlu0 %v488_v41  ;;  %v771_v41 = vsub.s32 4, %v1327_v14 }
 0x18b   : > { %v490_v42 = vpop.xlane.xlu0 %489 }
 0x18c   : > { %v492_v43 = vmul.f32 0.03125, %v490_v42  ;;  %v776_v42 = vsub.s32 5, %v1327_v14 }
 0x18e   : > { %v493_v44 = vsub.f32 %v487_v40, %v492_v43  ;;  %v772_v43 = vrot.slane %v1370_v33, %v771_v41 }
 0x190   : > { %v494_v45 = vmul.f32 %v493_v44, %v493_v44 }
 0x192   : > { %v495_v46 = vsel %vm259_vm1, %v494_v45, 0.0 }
 0x193   : > { %496 = vadd.xlane.f32.xlu0 %v495_v46  ;;  %v777_v46 = vrot.slane %v1370_v33, %v776_v42 }
 0x1a9   : > { %781 = vperm.xlu0 %1141, %v1370_v33  }
 0x220   : > { %v497_v59 = vpop.xlane.xlu0 %496 }
 0x221   : > { %v498_v60 = vmul.f32 0.03125, %v497_v59 }
 0x223   : > { %v499_v61 = vadd.f32 1e-05, %v498_v60 }
 0x225   : > { %1142 = vrsqrt.f32 %v499_v61 }
 0x228   : > { %v782_v50 = vpop.permute.xlu0 %781 }
 0x229   : > { %v784_v14 = vrot.slane %v782_v50, 7 }
 0x22f   : > { %v1143_v1 = vpop.eup %1142 }
 0x230   : > { %v501_v2 = vmul.f32 %v1143_v1, %v493_v44 }
 0x232   : > { %v506_v7 = vmul.f32 %v505_v0, %v501_v2 }
 0x234   : > { %v511_v9 = vadd.f32 %v510_v3, %v506_v7 }
 0x236   : > { %1033 = vmatmul.mubr.msk.f32.vlgmr.msra.gmra.mrb[2].mxu1 %vm259_vm1, %v511_v9  ;;  %v512_v13 = vrot.slane %v511_v9, 7  ;;  %v514_v17 = vrot.slane %v511_v9, 1 }
 0x237   : > { %1094 = vmatpush3.bf16.msra.mxu1 %v1093_v8  ;;  %1054 = vmatprep.mubr.msk.f32.mxu1 %vm1211_vm0, %v1212_v12 }
 0x238   : > { %v513_v16 = vsel %vm237_vm2, 0.0, %v512_v13  ;;  %1095 = vmatprep.subr.bf16.mxu1 %v1210_v4  ;;  %v515_v18 = vsel %vm242_vm3, 0.0, %v514_v17  ;;  %v751_v4 = vrot.slane %v1370_v33, %v750_v22 }
 0x239   : > { %1044 = vmatmul.mubr.msk.f32.vlgmr.msra.gmra.mrb[4].mxu0 %vm259_vm1, %v513_v16 }
 0x23a   : > { %1059 = vmatprep.mubr.msk.f32.mxu0 %vm1211_vm0, %v1212_v12 }
 0x23b   : > { %1097 = vmatpush3.bf16.msra.mxu1 %v1096_v15 }
 0x23e   : > { %1055 = vmatmul.mubr.msk.f32.vlgmr.msra.gmra.mrb[4].mxu1 %vm259_vm1, %v515_v18 }
 0x309   : > { %v597_v19 = vpop.f32.mrb[2].mxu1 }
 0x30a   : > { %v1034_v20 = vpop.f32.mrb[3].mxu1 }
 0x30c   : > { %v670_v21 = vpop.f32.mrb[4].mxu0 }
 0x30d   : > { %v671_v23 = vadd.f32 %v670_v21, %v597_v19  ;;  %v1045_v24 = vpop.f32.mrb[5].mxu0 }
 0x311   : > { %v743_v25 = vpop.f32.mrb[4].mxu1 }
 0x312   : > { %v747_v26 = vadd.f32 %v743_v25, %v671_v23  ;;  %v1056_v27 = vpop.f32.mrb[5].mxu1 }
 0x314   : > { %v752_v28 = vadd.f32 %v751_v4, %v747_v26 }
 0x316   : > { %vm753_vm5 = vcmp.ge.f32.partialorder %v752_v28, 0.0  ;;  %v754_v12 = vmul.f32 0.01, %v752_v28 }
 0x318   : > { %v755_v29 = vsel %vm753_vm5, %v752_v28, %v754_v12 }
 0x319   : > { %v756_v30 = vsel %vm259_vm1, %v755_v29, 0.0 }
 0x31a   : > { %757 = vadd.xlane.f32.xlu1 %v756_v30 }
 0x3a7   : > { %v758_v31 = vpop.xlane.xlu1 %757 }
 0x3a8   : > { %v759_v32 = vmul.f32 0.03125, %v758_v31 }
 0x3aa   : > { %v760_v34 = vsub.f32 %v755_v29, %v759_v32 }
 0x3ac   : > { %v761_v35 = vmul.f32 %v760_v34, %v760_v34 }
 0x3ae   : > { %v762_v36 = vsel %vm259_vm1, %v761_v35, 0.0 }
 0x3af   : > { %763 = vadd.xlane.f32.xlu1 %v762_v36 }
 0x43c   : > { %v764_v38 = vpop.xlane.xlu1 %763 }
 0x43d   : > { %v765_v39 = vmul.f32 0.03125, %v764_v38 }
 0x43f   : > { %v766_v40 = vadd.f32 1e-05, %v765_v39 }
 0x441   : > { %1144 = vrsqrt.f32 %v766_v40 }
 0x44b   : > { %v1145_v44 = vpop.eup %1144 }
 0x44c   : > { %v768_v45 = vmul.f32 %v1145_v44, %v760_v34 }
 0x44e   : > { %v773_v47 = vmul.f32 %v772_v43, %v768_v45 }
 0x450   : > { %v778_v48 = vadd.f32 %v777_v46, %v773_v47 }
 0x452   : > { %1058 = vmatpush3.xpose.msk.msra.mxu0 %vm259_vm1, %v778_v48 }
 0x455   : > { %1060 = vmatmul.mubr.msk.f32.vlgmr.msra.gmra.mrb[6].mxu0 %vm259_vm1, %v783_v49 }
 0x528   : > { %v857_v52 = vpop.f32.mrb[6].mxu0 }
 0x529   : > { %v858_v53 = vadd.f32 %v857_v52, %v784_v14  ;;  %v1061_v33 = vpop.f32.mrb[7].mxu0 }
 0x52b   : > { %v863_v54 = vsel %vm862_vm6, 0.0, %v858_v53 }
 0x52c   : > { %865 = vst.msk [vmem:[%s225_s25] sm:$0x1] %vm864_vm7, %v863_v54 }
 0x52d   : > { %1159 = shalt.err (!%p1156_p3)
}
 0x52e   : > { %s1160_s12 = scalar_lea.hbm %s1452_s8, 16  ;;  %s1164_s15 = scalar_lea.hbm %s1499_s5, 32 }
 0x52f   : > { %p1161_p4 = scmp.ne.s32.totalorder %s1452_s8, %s1160_s12  ;;  %p1165_p9 = scmp.lt.u32.totalorder %s1452_s8, %s1499_s5 }
 0x530   : > { %p1166_p10 = scmp.lt.u32.totalorder %s1164_s15, %s1160_s12  ;;  %p1168_p12 = scmp.lt.u32.totalorder %s1160_s12, %s1452_s8 }
 0x531   : > { %p1162_p7 = pnand %p1161_p4, %p1283_p5 }
 0x532   : > { %p1167_p11 = por %p1166_p10, %p1165_p9 }
 0x533   : > { %p1163_p8 = pneg %p1162_p7 }
 0x534   : > { %p1169_p13 = por %p1168_p12, %p1167_p11 }
 0x536   : > { %p1170_p0 = pnand %p1169_p13, %p1163_p8 }
 0x538   : > { %1173 = shalt.err (!%p1170_p0)
}
 0x539   : > { %1098 = dma.vmem_to_hbm [thread:$0]  (%p1283_p5), %s1454_s26, 16, %s1452_s8, %s867_s22  }
 0x53a PF: > { %p1104_p1 = scmp.ge.s32.totalorder %s1208_s21, 2  ;;  %s891_s23 = sand.u32 1, %s1196_s18  }
 0x53b   : > { %s892_s25 = scalar_lea.sflag [#allocation3], %s891_s23 }
 0x53c   : > { %p1101_p2 = pnand %p1104_p1, %p1287_p6 }
 0x53e   : > { %1191 = dma.done.wait (!%p1101_p2), %s892_s25, 16  }
 0x53f   : > { %1193 = vsyncadd (!%p1101_p2), %s892_s25, 4294967280  ;;  %p15_p3 = scmp.ge.s32.totalorder %s1270_s24, 4   ;;  %s1502_s18 = smov %s1200_s19 }
 0x540   : > { %s1503_s19 = smov %s1204_s20  ;;  %s1504_s20 = smov %s1281_s27 }
 0x541   : > { %s1505_s21 = smov %s1270_s24  ;;  %17 = sbr.rel (!%p15_p3) target bundleno = 3 (0x3), region = 78 }
 0x548   :  { %896 = vsyncpa [#allocation3], 1 }
 0x549   :  { %898 = vsyncpa [#allocation3 + $0x1], 1 }

</bundles_post_ra>
